<compile_context>
chip_gen: v6e
topology: v6e:2x2x1
jax: 0.10.0
libtpu: 0.0.40
codegen_flags: <defaults>
</compile_context>

<pallas_src>
import functools

import jax
import jax.numpy as jnp
from jax.experimental import pallas as pl
from jax.experimental.pallas import tpu as pltpu


def _round_up(n, m):
    return ((n + m - 1) // m) * m


def _cheby_kan_kernel(x_ref, w_ref, b_ref, o_ref, slab_ref, *extra,
                      input_dim, dk, multi_chunk):
    """One (batch-tile, degree-chunk) grid step.

    x_ref    : (bb, I)     input rows (any float dtype; promoted to f32)
    w_ref    : (dk*I, O)   bf16 weight chunk for degrees [k*dk+1 .. (k+1)*dk]
    b_ref    : (1, O)      f32 bias (folded T_0 contribution)
    o_ref    : (bb, O)     output tile (written at the last degree chunk)
    slab_ref : (bb, dk*I)  bf16 scratch holding this chunk's T_d values
    extra    : ()                          when multi_chunk == False
               (acc_ref, tp_ref, tc_ref)   when multi_chunk == True
    """
    x = jnp.tanh(x_ref[...].astype(jnp.float32))     # recurrence stays in f32
    two_x = x + x                                    # hoisted out of the loop

    if multi_chunk:
        acc_ref, tp_ref, tc_ref = extra
        k = pl.program_id(1)

        @pl.when(k == 0)
        def _():
            # Seed so the uniform recurrence below emits T_1 = x first:
            # T_{-1} = x, T_0 = 1  ->  2x*T_0 - T_{-1} = x.
            tp_ref[...] = x
            tc_ref[...] = jnp.ones_like(x)

        t_prev = tp_ref[...]
        t_cur = tc_ref[...]
    else:
        t_prev = x
        t_cur = jnp.ones_like(x)

    # Write each T_d straight into the bf16 slab at a static column offset —
    # only t_prev/t_cur/t_next stay live, no per-degree list, no concatenate.
    for j in range(dk):
        t_next = two_x * t_cur - t_prev
        slab_ref[:, j * input_dim:(j + 1) * input_dim] = t_next.astype(jnp.bfloat16)
        t_prev, t_cur = t_cur, t_next

    # One fused MXU matmul per chunk: bf16 operands, f32 accumulation.
    p = jnp.dot(slab_ref[...], w_ref[...], preferred_element_type=jnp.float32)

    if multi_chunk:
        tp_ref[...] = t_prev                         # carry to next degree chunk
        tc_ref[...] = t_cur

        @pl.when(k == 0)
        def _():
            acc_ref[...] = p

        @pl.when(k > 0)
        def _():
            acc_ref[...] = acc_ref[...] + p

        @pl.when(k == pl.num_programs(1) - 1)
        def _():
            o_ref[...] = (acc_ref[...] + b_ref[...]).astype(o_ref.dtype)
    else:
        o_ref[...] = (p + b_ref[...]).astype(o_ref.dtype)


def pack_cheby_kan_params(coeffs, *, max_weight_chunk_bytes=8 << 20,
                          k_chunk_degrees=None):
    """One-time parameter repack (kept out of the per-step forward).

    coeffs: (input_dim, output_dim, degree + 1) — layout of `cheby2_coeffs`.
    Returns a params dict consumed by cheby_kan_forward().
    """
    input_dim, output_dim, deg_p1 = coeffs.shape
    degree = deg_p1 - 1
    coeffs = coeffs.astype(jnp.float32)

    # T_0 == 1 for every row -> its contribution is a pure bias (column sum).
    bias = jnp.sum(coeffs[:, :, 0], axis=0).reshape(1, output_dim)

    params = dict(input_dim=input_dim, output_dim=output_dim, degree=degree,
                  bias=bias, w=None, dk=0, num_k=1)
    if degree == 0:
        return params

    # Degrees per K-chunk: keep one bf16 weight chunk (double-buffered in VMEM)
    # under max_weight_chunk_bytes so big layers still fit v7x's 64 MiB VMEM.
    per_degree_bytes = input_dim * output_dim * 2
    if k_chunk_degrees is not None:
        dk = max(1, min(int(k_chunk_degrees), degree))
    elif degree * per_degree_bytes > max_weight_chunk_bytes:
        dk = min(degree, max(1, max_weight_chunk_bytes // per_degree_bytes))
    else:
        dk = degree
    # Chunked weight blocks need an 8-divisible sublane dim; otherwise fall back
    # to a single chunk (full-array block shapes are always legal).
    if dk < degree and (dk * input_dim) % 8 != 0:
        dk = degree
    num_k = pl.cdiv(degree, dk)

    # (I, O, D+1) -> drop degree 0 -> (D, I, O) -> zero-pad to num_k*dk degrees
    # -> (num_k*dk*I, O) in bf16.  Padded degrees multiply a zero weight, so the
    # extra (finite, |T| <= 1) polynomials the kernel computes contribute 0.
    w = jnp.transpose(coeffs[:, :, 1:], (2, 0, 1))
    pad_d = num_k * dk - degree
    if pad_d:
        w = jnp.pad(w, ((0, pad_d), (0, 0), (0, 0)))
    w = w.reshape(num_k * dk * input_dim, output_dim).astype(jnp.bfloat16)

    params.update(w=w, dk=dk, num_k=num_k)
    return params


def _vmem_bytes(bb, input_dim, output_dim, dk, num_k, out_bytes):
    est = 2 * bb * input_dim * 4                   # x tile (double-buffered)
    est += 2 * dk * input_dim * output_dim * 2     # weight chunk (2 buffers)
    est += 2 * output_dim * 4                      # bias
    est += 2 * bb * output_dim * out_bytes         # output tile (2 buffers)
    est += bb * dk * input_dim * 2                 # bf16 T slab scratch
    if num_k > 1:
        est += bb * output_dim * 4                 # f32 accumulator
        est += 2 * bb * input_dim * 4              # (t_prev, t_cur) carry
    return est


def cheby_kan_forward(params, x, *, block_b=1024, out_dtype=jnp.bfloat16,
                      vmem_budget_bytes=40 << 20):
    """ChebyKANLayer forward.  x: any shape with size % input_dim == 0.
    Returns (B, output_dim), B = x.size // input_dim.  bf16 output by default;
    use out_dtype=jnp.float32 for exact parity with the f32 PyTorch module."""
    input_dim = params["input_dim"]
    output_dim = params["output_dim"]
    degree = params["degree"]

    x2d = jnp.reshape(x, (-1, input_dim))          # metadata-only reshape
    B = x2d.shape[0]
    bias = params["bias"]

    if degree == 0:
        return jnp.broadcast_to(bias, (B, output_dim)).astype(out_dtype)

    w, dk, num_k = params["w"], params["dk"], params["num_k"]
    out_bytes = jnp.dtype(out_dtype).itemsize

    # ---- batch tile selection --------------------------------------------
    if B <= 8:
        bb = B                                     # full-dim block, always legal
    else:
        bb = min(block_b, _round_up(B, 8))
        if B > 16:
            # >= 2 grid steps: both v7x TensorCores get work and the pipeline
            # has something to prefetch on every generation.
            bb = min(bb, max(8, _round_up(pl.cdiv(B, 2), 8)))
        # Shrink to a conservative VMEM budget (v7x: 64 MiB physical per TC).
        while bb > 64 and _vmem_bytes(bb, input_dim, output_dim, dk, num_k,
                                      out_bytes) > vmem_budget_bytes:
            bb = max(64, _round_up(bb // 2, 8))
    grid_b = pl.cdiv(B, bb)

    est = _vmem_bytes(bb, input_dim, output_dim, dk, num_k, out_bytes)
    vmem_limit = int(min(56 << 20, max(2 * est, 16 << 20)))

    kernel = functools.partial(_cheby_kan_kernel, input_dim=input_dim, dk=dk,
                               multi_chunk=num_k > 1)

    scratch = [pltpu.VMEM((bb, dk * input_dim), jnp.bfloat16)]      # T slab
    if num_k > 1:
        scratch += [pltpu.VMEM((bb, output_dim), jnp.float32),      # f32 acc
                    pltpu.VMEM((bb, input_dim), jnp.float32),       # T_{d-1}
                    pltpu.VMEM((bb, input_dim), jnp.float32)]       # T_d

    return pl.pallas_call(
        kernel,
        out_shape=jax.ShapeDtypeStruct((B, output_dim), out_dtype),
        grid_spec=pltpu.PrefetchScalarGridSpec(
            num_scalar_prefetch=0,
            grid=(grid_b, num_k),                  # degree chunks innermost
            in_specs=[
                pl.BlockSpec((bb, input_dim), lambda i, k: (i, 0)),
                pl.BlockSpec((dk * input_dim, output_dim), lambda i, k: (k, 0)),
                pl.BlockSpec((1, output_dim), lambda i, k: (0, 0)),
            ],
            out_specs=pl.BlockSpec((bb, output_dim), lambda i, k: (i, 0)),
            scratch_shapes=scratch,
        ),
        compiler_params=pltpu.CompilerParams(
            dimension_semantics=("parallel", "arbitrary"),
            vmem_limit_bytes=vmem_limit),
    )(x2d, w, bias)


def cheby_kan_reference(x, coeffs):
    """Pure-JAX f32 reference mirroring the PyTorch forward exactly."""
    input_dim, _, deg_p1 = coeffs.shape
    degree = deg_p1 - 1
    xt = jnp.tanh(jnp.reshape(x, (-1, input_dim)).astype(jnp.float32))
    polys = [jnp.ones_like(xt)]
    if degree > 0:
        polys.append(xt)
    for _ in range(2, degree + 1):
        polys.append(2.0 * xt * polys[-1] - polys[-2])
    cheby = jnp.stack(polys, axis=-1)              # (B, I, D+1)
    return jnp.einsum('bid,iod->bo', cheby, coeffs.astype(jnp.float32))


if __name__ == "__main__":
    # --- Demo at the module's natural small shapes --------------------------
    input_dim, output_dim, degree = 16, 32, 4      # ChebyKAN default degree = 4
    key = jax.random.PRNGKey(0)
    k_x, k_w, k_x2, k_w2 = jax.random.split(key, 4)

    # nn.init.normal_(mean=0, std=1/(input_dim*(degree+1)))
    std = 1.0 / (input_dim * (degree + 1))
    coeffs = std * jax.random.normal(
        k_w, (input_dim, output_dim, degree + 1), dtype=jnp.float32)

    # Flattens to (2*4*16*16)/16 = 128 rows of input_dim.
    x = jax.random.normal(k_x, (2, 4, 16, 16), dtype=jnp.float32)

    params = pack_cheby_kan_params(coeffs)         # one-time weight repack
    y = jax.block_until_ready(cheby_kan_forward(params, x))

    y_ref = cheby_kan_reference(x, coeffs)
    assert y.shape == (128, output_dim), y.shape
    # bf16 matmul operands + bf16 output (f32 accumulation) -> relaxed tol.
    assert jnp.allclose(y.astype(jnp.float32), y_ref, atol=5e-3, rtol=5e-3), \
        "mismatch vs reference (single-chunk path)"

    # --- Exercise the K-chunked (multi degree-chunk) + ragged-batch path ----
    i2, o2, d2 = 32, 64, 7
    std2 = 1.0 / (i2 * (d2 + 1))
    coeffs2 = std2 * jax.random.normal(k_w2, (i2, o2, d2 + 1), dtype=jnp.float32)
    x2 = jax.random.normal(k_x2, (72, i2), dtype=jnp.float32)
    params2 = pack_cheby_kan_params(coeffs2, k_chunk_degrees=2)    # 4 K chunks
    y2 = jax.block_until_ready(cheby_kan_forward(params2, x2))
    y2_ref = cheby_kan_reference(x2, coeffs2)
    assert y2.shape == (72, o2), y2.shape
    assert jnp.allclose(y2.astype(jnp.float32), y2_ref, atol=5e-3, rtol=5e-3), \
        "mismatch vs reference (K-chunked path)"

    print("KERNEL_OK")
</pallas_src>

<mosaic_0001>
module attributes {stable_mosaic.version = 11 : i64} {
  func.func @_cheby_kan_kernel(%arg0: i32, %arg1: i32, %arg2: memref<64x16xf32, #tpu.memory_space<vmem>>, %arg3: memref<64x32xbf16, #tpu.memory_space<vmem>>, %arg4: memref<1x32xf32, #tpu.memory_space<vmem>>, %arg5: memref<64x32xbf16, #tpu.memory_space<vmem>>, %arg6: memref<64x64xbf16, #tpu.memory_space<vmem>>) attributes {dimension_semantics = [#tpu.dimension_semantics<parallel>, #tpu.dimension_semantics<arbitrary>], iteration_bounds = array<i64: 2, 1>, scalar_prefetch = 0 : i64, scratch_operands = 1 : i64, tpu.core_type = #tpu.core_type<tc>, window_params = [{transform_indices = @transform_0, window_bounds = array<i64: 64, 16>}, {transform_indices = @transform_1, window_bounds = array<i64: 64, 32>}, {pipeline_mode = #tpu.pipeline_mode<synchronous>, transform_indices = @transform_2, window_bounds = array<i64: 1, 32>}, {transform_indices = @transform_3, window_bounds = array<i64: 64, 32>}]} {
    %c0 = arith.constant 0 : index
    %c0_0 = arith.constant 0 : index
    %0 = vector.load %arg2[%c0, %c0_0] : memref<64x16xf32, #tpu.memory_space<vmem>>, vector<64x16xf32>
    %1 = math.tanh %0 : vector<64x16xf32>
    %2 = arith.addf %1, %1 : vector<64x16xf32>
    %cst = arith.constant 1.000000e+00 : f32
    %3 = vector.broadcast %cst : f32 to vector<64x16xf32>
    %4 = arith.mulf %2, %3 : vector<64x16xf32>
    %5 = arith.subf %4, %1 : vector<64x16xf32>
    %6 = arith.truncf %5 : vector<64x16xf32> to vector<64x16xbf16>
    %c0_1 = arith.constant 0 : index
    %c0_2 = arith.constant 0 : index
    %7 = vector.load %arg6[%c0_1, %c0_2] : memref<64x64xbf16, #tpu.memory_space<vmem>>, vector<64x16xbf16>
    tpu.vector_store %arg6[%c0_1, %c0_2], %6 {strides = array<i32>} : memref<64x64xbf16, #tpu.memory_space<vmem>>, vector<64x16xbf16>,
    %8 = arith.mulf %2, %5 : vector<64x16xf32>
    %9 = arith.subf %8, %3 : vector<64x16xf32>
    %10 = arith.truncf %9 : vector<64x16xf32> to vector<64x16xbf16>
    %c0_3 = arith.constant 0 : index
    %c16 = arith.constant 16 : index
    %11 = vector.load %arg6[%c0_3, %c16] : memref<64x64xbf16, #tpu.memory_space<vmem>>, vector<64x16xbf16>
    tpu.vector_store %arg6[%c0_3, %c16], %10 {strides = array<i32>} : memref<64x64xbf16, #tpu.memory_space<vmem>>, vector<64x16xbf16>,
    %12 = arith.mulf %2, %9 : vector<64x16xf32>
    %13 = arith.subf %12, %5 : vector<64x16xf32>
    %14 = arith.truncf %13 : vector<64x16xf32> to vector<64x16xbf16>
    %c0_4 = arith.constant 0 : index
    %c32 = arith.constant 32 : index
    %15 = vector.load %arg6[%c0_4, %c32] : memref<64x64xbf16, #tpu.memory_space<vmem>>, vector<64x16xbf16>
    tpu.vector_store %arg6[%c0_4, %c32], %14 {strides = array<i32>} : memref<64x64xbf16, #tpu.memory_space<vmem>>, vector<64x16xbf16>,
    %16 = arith.mulf %2, %13 : vector<64x16xf32>
    %17 = arith.subf %16, %9 : vector<64x16xf32>
    %18 = arith.truncf %17 : vector<64x16xf32> to vector<64x16xbf16>
    %c0_5 = arith.constant 0 : index
    %c48 = arith.constant 48 : index
    %19 = vector.load %arg6[%c0_5, %c48] : memref<64x64xbf16, #tpu.memory_space<vmem>>, vector<64x16xbf16>
    tpu.vector_store %arg6[%c0_5, %c48], %18 {strides = array<i32>} : memref<64x64xbf16, #tpu.memory_space<vmem>>, vector<64x16xbf16>,
    %c0_6 = arith.constant 0 : index
    %c0_7 = arith.constant 0 : index
    %20 = vector.load %arg6[%c0_6, %c0_7] : memref<64x64xbf16, #tpu.memory_space<vmem>>, vector<64x64xbf16>
    %c0_8 = arith.constant 0 : index
    %c0_9 = arith.constant 0 : index
    %21 = vector.load %arg3[%c0_8, %c0_9] : memref<64x32xbf16, #tpu.memory_space<vmem>>, vector<64x32xbf16>
    %cst_10 = arith.constant dense<0.000000e+00> : vector<64x32xf32>
    %22 = tpu.matmul %20, %21, %cst_10 {dimension_numbers = #tpu.dot_dimension_numbers<[1], [0], [0], [1], [0, 0, 1, 1], [], []>} : vector<64x64xbf16>, vector<64x32xbf16>, vector<64x32xf32> -> vector<64x32xf32>
    %c0_11 = arith.constant 0 : index
    %c0_12 = arith.constant 0 : index
    %23 = vector.load %arg4[%c0_11, %c0_12] : memref<1x32xf32, #tpu.memory_space<vmem>>, vector<1x32xf32>
    %24 = vector.broadcast %23 : vector<1x32xf32> to vector<64x32xf32>
    %25 = arith.addf %22, %24 : vector<64x32xf32>
    %26 = arith.truncf %25 : vector<64x32xf32> to vector<64x32xbf16>
    %c0_13 = arith.constant 0 : index
    %c0_14 = arith.constant 0 : index
    %27 = vector.load %arg5[%c0_13, %c0_14] : memref<64x32xbf16, #tpu.memory_space<vmem>>, vector<64x32xbf16>
    tpu.vector_store %arg5[%c0_13, %c0_14], %26 {strides = array<i32>} : memref<64x32xbf16, #tpu.memory_space<vmem>>, vector<64x32xbf16>,
    return
  }
  func.func @transform_0(%arg0: i32, %arg1: i32) -> (i32, i32) {
    %c0_i32 = arith.constant 0 : i32
    %c0_i32_0 = arith.constant 0 : i32
    return %arg0, %c0_i32 : i32, i32
  }
  func.func @transform_1(%arg0: i32, %arg1: i32) -> (i32, i32) {
    %c0_i32 = arith.constant 0 : i32
    %c0_i32_0 = arith.constant 0 : i32
    return %arg1, %c0_i32 : i32, i32
  }
  func.func @transform_2(%arg0: i32, %arg1: i32) -> (i32, i32) {
    %c0_i32 = arith.constant 0 : i32
    %c0_i32_0 = arith.constant 0 : i32
    %c0_i32_1 = arith.constant 0 : i32
    return %c0_i32, %c0_i32_0 : i32, i32
  }
  func.func @transform_3(%arg0: i32, %arg1: i32) -> (i32, i32) {
    %c0_i32 = arith.constant 0 : i32
    %c0_i32_0 = arith.constant 0 : i32
    return %arg0, %c0_i32 : i32, i32
  }
}

</mosaic_0001>

<bundles_post_ra>
// kernel: tpu_custom_call.1
= control target key start
LH: loop header
LB: loop body
LE: loop exit
PB: predicated region body
PF: predicated region fallthrough
CT: control target
= control target key end

     0   :  { %s1010_s12 = smov 0   ;;  %s1012_s13 = smov 0   ;;  %s1240_s0 = inlined_call_operand.vmem [shape: f32[128,16], index: 0, kind: input, shape index: {}]   ;;  %s1241_s1 = inlined_call_operand.vmem [shape: bf16[64,32], index: 1, kind: input, shape index: {}]   ;;  %s1242_s2 = inlined_call_operand.vmem [shape: f32[1,32], index: 2, kind: input, shape index: {}]   ;;  %s1243_s3 = inlined_call_operand.vmem [shape: bf16[128,32], index: 3, kind: output, shape index: {}]  }
   0x1   :  { %s1014_s14 = smov 0  }
   0x2 LB: > { %s25_s15 = sadd.s32 1, %s981_s13  ;;  %p772_p0 = scmp.ge.s32.totalorder %s985_s14, 1  ;;  %s985_s14 = sphi %s1014_s14, %s13_s14   ;;  %s981_s13 = sphi %s1012_s13, %s1245_s13   ;;  %s977_s12 = sphi %s1010_s12, %s1244_s12  }
   0x3   : > { %p27_p1 = scmp.ge.s32.totalorder %s25_s15, 2  ;;  %p161_p2 = scmp.lt.s32.totalorder %s985_s14, 3 }
   0x5   : > { %s1247_s15 = smov (%p27_p1, %s25_s15), 0  ;;  %p162_p3 = pnand %p772_p0, %p161_p2 }
   0x6   : > { %s773_s16 = sshll.u32 (!%p162_p3), %s977_s12, 3  ;;  %s987_s21 = smov (!%p162_p3), 16  }
   0x7   : > { %165 = sbr.rel (%p162_p3) target bundleno = 412 (0x19c), region = 32  ;;  %p191_p4 = scmp.lt.s32.totalorder (!%p162_p3), %s773_s16, 15 }
   0x8   : > { %s988_s22 = smov (!%p162_p3), 32   ;;  %s989_s4 = smov (!%p162_p3), 48  }
   0xc   : > { %s1249_s16 = smov (!%p191_p4, %s773_s16), 15  ;;  %vm273_vm0 = vcmask 125952   ;;  %vm346_vm1 = vcmask 257152   ;;  %vm419_vm2 = vcmask 388352   ;;  %vm492_vm3 = vcmask 519552  }
   0xd   : > { %s774_s17 = sshll.u32 %s1249_s16, 3  ;;  %vm568_vm4 = vcmask 523264   ;;  %s776_s7 = sshll.u32 %s1249_s16, 2  ;;  %vm678_vm5 = vcmask 257024  }
   0xe   : > { %s194_s20 = scalar_lea.vmem %s1240_s0, %s774_s17  ;;  %s1213_s10 = scalar_lea.vmem %s1243_s3, %s776_s7 }
   0xf   : > { %v213_v0 = vld [vmem:[%s194_s20 + $0x20] sm:$0xff]  ;;  %v214_v2 = vld [vmem:[%s194_s20 + $0x28] sm:$0xff]  ;;  %v212_v4 = vld [vmem:[%s194_s20 + $0x18] sm:$0xff] }
  0x10   : > { %v209_v1 = vld [vmem:[%s194_s20] sm:$0xff]  ;;  %947 = vtanh.f32 %v213_v0  ;;  %v210_v3 = vld [vmem:[%s194_s20 + $0x8] sm:$0xff]  ;;  %v211_v5 = vld [vmem:[%s194_s20 + $0x10] sm:$0xff] }
  0x11   : > { %949 = vtanh.f32 %v209_v1  ;;  %v216_v6 = vld [vmem:[%s194_s20 + $0x38] sm:$0xff]  ;;  %v215_v7 = vld [vmem:[%s194_s20 + $0x30] sm:$0xff] }
  0x12   : > { %951 = vtanh.f32 %v214_v2 }
  0x13   : > { %953 = vtanh.f32 %v210_v3 }
  0x14   : > { %955 = vtanh.f32 %v212_v4 }
  0x15   : > { %957 = vtanh.f32 %v211_v5 }
  0x16   : > { %959 = vtanh.f32 %v216_v6 }
  0x17   : > { %961 = vtanh.f32 %v215_v7 }
  0x1d   : > { %v948_v8 = vpop.eup %947 }
  0x1e   : > { %v950_v9 = vpop.eup %949  ;;  %v1034_v10 = vadd.f32 %v948_v8, %v948_v8 }
  0x1f   : > { %v952_v11 = vpop.eup %951  ;;  %v1036_v12 = vadd.f32 %v950_v9, %v950_v9 }
  0x20   : > { %v954_v13 = vpop.eup %953  ;;  %v1039_v14 = vsub.f32 %v1034_v10, %v948_v8  ;;  %v1041_v15 = vadd.f32 %v952_v11, %v952_v11 }
  0x21   : > { %v956_v16 = vpop.eup %955  ;;  %v233_v17 = vsub.f32 %v1036_v12, %v950_v9  ;;  %v1044_v18 = vadd.f32 %v954_v13, %v954_v13 }
  0x22   : > { %v958_v19 = vpop.eup %957  ;;  %v286_v20 = vmul.f32 %v1039_v14, %v1034_v10  ;;  %v1049_v21 = vsub.f32 %v1041_v15, %v952_v11  ;;  %v1051_v22 = vadd.f32 %v956_v16, %v956_v16  ;;  %v844_v23 = vpack.c.bf16 %v1039_v14, %v1039_v14 }
  0x23   : > { %v960_v24 = vpop.eup %959  ;;  %v282_v25 = vmul.f32 %v233_v17, %v1036_v12  ;;  %v234_v26 = vsub.f32 %v1044_v18, %v954_v13  ;;  %v1057_v27 = vadd.f32 %v958_v19, %v958_v19  ;;  %v840_v28 = vpack.c.bf16 %v233_v17, %v233_v17 }
  0x24   : > { %v962_v29 = vpop.eup %961  ;;  %v1059_v30 = vadd.f32 -1.0, %v286_v20  ;;  %v287_v31 = vmul.f32 %v1049_v21, %v1041_v15  ;;  %v1064_v32 = vsub.f32 %v1051_v22, %v956_v16  ;;  %v1066_v33 = vadd.f32 %v960_v24, %v960_v24  ;;  %278 = vst.msk [vmem:[#allocation2 + $0x10] sm:$0xf] %vm273_vm0, %v844_v23  ;;  %v939_v23 = vld [vmem:[%s1241_s1 + $0x18] sm:$0xff]  }
  0x25   : > { %v1069_v34 = vadd.f32 -1.0, %v282_v25  ;;  %v283_v35 = vmul.f32 %v234_v26, %v1044_v18  ;;  %v1073_v36 = vsub.f32 %v1057_v27, %v958_v19  ;;  %v1075_v37 = vadd.f32 %v962_v29, %v962_v29  ;;  %274 = vst.msk [vmem:[#allocation2] sm:$0xf] %vm273_vm0, %v840_v28  ;;  %888 = vmatprep.subr.bf16.mxu0 %v939_v23 }
  0x26   : > { %v852_v38 = vpack.c.bf16 %v1059_v30, %v1059_v30  ;;  %v1080_v39 = vadd.f32 -1.0, %v287_v31  ;;  %v285_v40 = vmul.f32 %v1064_v32, %v1051_v22  ;;  %v240_v41 = vsub.f32 %v1066_v33, %v960_v24  ;;  %889 = vmatpush3.bf16.msra.mxu0 %v939_v23  ;;  %904 = vmatprep.subr.bf16.mxu1 %v939_v23 }
  0x27   : > { %v848_v42 = vpack.c.bf16 %v1069_v34, %v1069_v34  ;;  %v1087_v43 = vadd.f32 -1.0, %v283_v35  ;;  %v284_v44 = vmul.f32 %v1073_v36, %v1057_v27  ;;  %v239_v45 = vsub.f32 %v1075_v37, %v962_v29  ;;  %908 = vmatpush3.bf16.msra.mxu1 %v939_v23 }
  0x28   : > { %330 = vrot.lane.b32.xlu1 %v852_v38, %s987_s21  ;;  %v853_v46 = vpack.c.bf16 %v1080_v39, %v1080_v39  ;;  %v1094_v47 = vadd.f32 -1.0, %v285_v40  ;;  %v289_v48 = vmul.f32 %v240_v41, %v1066_v33  ;;  %v355_v55 = vmul.f32 %v1069_v34, %v1036_v12 }
  0x29   : > { %322 = vrot.lane.b32.xlu0 %v848_v42, %s987_s21  ;;  %v849_v49 = vpack.c.bf16 %v1087_v43, %v1087_v43  ;;  %v1099_v50 = vadd.f32 -1.0, %v284_v44  ;;  %v288_v51 = vmul.f32 %v239_v45, %v1075_v37  ;;  %v356_v54 = vmul.f32 %v1087_v43, %v1044_v18 }
  0x2a   : > { %v851_v52 = vpack.c.bf16 %v1094_v47, %v1094_v47  ;;  %v1104_v53 = vadd.f32 -1.0, %v289_v48  ;;  %v363_v60 = vsub.f32 %v355_v55, %v233_v17  ;;  %v360_v61 = vmul.f32 %v1080_v39, %v1041_v15 }
  0x2b   : > { %v850_v56 = vpack.c.bf16 %v1099_v50, %v1099_v50  ;;  %v1112_v57 = vadd.f32 -1.0, %v288_v51  ;;  %v364_v59 = vsub.f32 %v356_v54, %v234_v26  ;;  %v359_v63 = vmul.f32 %v1059_v30, %v1034_v10 }
  0x2c   : > { %332 = vrot.lane.b32.xlu1 %v853_v46, %s987_s21  ;;  %v855_v58 = vpack.c.bf16 %v1104_v53, %v1104_v53  ;;  %v856_v1 = vpack.c.bf16 %v363_v60, %v363_v60  ;;  %v368_v2 = vsub.f32 %v360_v61, %v1049_v21  ;;  %v358_v3 = vmul.f32 %v1094_v47, %v1051_v22 }
  0x2d   : > { %324 = vrot.lane.b32.xlu0 %v849_v49, %s987_s21  ;;  %v854_v62 = vpack.c.bf16 %v1112_v57, %v1112_v57  ;;  %v857_v0 = vpack.c.bf16 %v364_v59, %v364_v59  ;;  %v367_v4 = vsub.f32 %v359_v63, %v1039_v14  ;;  %v357_v5 = vmul.f32 %v1099_v50, %v1057_v27 }
  0x2e   : > { %v845_v6 = vpack.c.bf16 %v1049_v21, %v1049_v21  ;;  %v841_v7 = vpack.c.bf16 %v234_v26, %v234_v26  ;;  %v843_v8 = vpack.c.bf16 %v1064_v32, %v1064_v32  ;;  %v842_v9 = vpack.c.bf16 %v1073_v36, %v1073_v36 }
  0x2f   : > { %v847_v11 = vpack.c.bf16 %v240_v41, %v240_v41  ;;  %v846_v13 = vpack.c.bf16 %v239_v45, %v239_v45  ;;  %v861_v14 = vpack.c.bf16 %v368_v2, %v368_v2  ;;  %v366_v16 = vsub.f32 %v358_v3, %v1064_v32  ;;  %v940_v32 = vld [vmem:[%s1241_s1 + $0x10] sm:$0xff]  }
  0x30   : > { %328 = vrot.lane.b32.xlu1 %v851_v52, %s987_s21  ;;  %279 = vst.msk [vmem:[#allocation2 + $0x14] sm:$0xf] %vm273_vm0, %v845_v6  ;;  %275 = vst.msk [vmem:[#allocation2 + $0x4] sm:$0xf] %vm273_vm0, %v841_v7  ;;  %v362_v17 = vmul.f32 %v1104_v53, %v1066_v33  ;;  %v860_v19 = vpack.c.bf16 %v367_v4, %v367_v4  ;;  %v365_v20 = vsub.f32 %v357_v5, %v1073_v36 }
  0x31   : > { %326 = vrot.lane.b32.xlu0 %v850_v56, %s987_s21  ;;  %277 = vst.msk [vmem:[#allocation2 + $0xc] sm:$0xf] %vm273_vm0, %v843_v8  ;;  %v361_v21 = vmul.f32 %v1112_v57, %v1075_v37  ;;  %276 = vst.msk [vmem:[#allocation2 + $0x8] sm:$0xf] %vm273_vm0, %v842_v9  ;;  %v859_v24 = vpack.c.bf16 %v366_v16, %v366_v16  ;;  %v429_v26 = vmul.f32 %v364_v59, %v1044_v18 }
  0x32   : > { %281 = vst.msk [vmem:[#allocation2 + $0x1c] sm:$0xf] %vm273_vm0, %v847_v11  ;;  %280 = vst.msk [vmem:[#allocation2 + $0x18] sm:$0xf] %vm273_vm0, %v846_v13  ;;  %v370_v25 = vsub.f32 %v362_v17, %v240_v41  ;;  %v858_v28 = vpack.c.bf16 %v365_v20, %v365_v20  ;;  %v428_v31 = vmul.f32 %v363_v60, %v1036_v12  ;;  %890 = vmatprep.subr.bf16.mxu0 %v940_v32  ;;  %v941_v41 = vld [vmem:[%s1241_s1 + $0x8] sm:$0xff]  }
  0x33   : > { %v369_v29 = vsub.f32 %v361_v21, %v239_v45  ;;  %v437_v36 = vsub.f32 %v429_v26, %v1087_v43  ;;  %v433_v18 = vmul.f32 %v368_v2, %v1041_v15  ;;  %v432_v40 = vmul.f32 %v367_v4, %v1034_v10  ;;  %891 = vmatpush3.bf16.msra.mxu0 %v940_v32  ;;  %v943_v45 = vld [vmem:[%s1241_s1] sm:$0xff]  }
  0x34   : > { %336 = vrot.lane.b32.xlu1 %v855_v58, %s987_s21  ;;  %v863_v35 = vpack.c.bf16 %v370_v25, %v370_v25  ;;  %v436_v12 = vsub.f32 %v428_v31, %v1069_v34  ;;  %905 = vmatprep.subr.bf16.mxu1 %v940_v32  ;;  %v431_v43 = vmul.f32 %v366_v16, %v1051_v22 }
  0x35   : > { %334 = vrot.lane.b32.xlu0 %v854_v62, %s987_s21  ;;  %v862_v38 = vpack.c.bf16 %v369_v29, %v369_v29  ;;  %909 = vmatpush3.bf16.msra.mxu1 %v940_v32  ;;  %v865_v42 = vpack.c.bf16 %v437_v36, %v437_v36  ;;  %v441_v15 = vsub.f32 %v433_v18, %v1080_v39 }
  0x36   : > { %v864_v34 = vpack.c.bf16 %v436_v12, %v436_v12  ;;  %v440_v10 = vsub.f32 %v432_v40, %v1059_v30  ;;  %v430_v44 = vmul.f32 %v365_v20, %v1057_v27  ;;  %892 = vmatprep.subr.bf16.mxu0 %v941_v41  ;;  %906 = vmatprep.subr.bf16.mxu1 %v941_v41  ;;  %v817_v20 = vld [vmem:[%s1242_s2] ss:$0 sm:$0xff] }
  0x37   : > { %893 = vmatpush3.bf16.msra.mxu0 %v941_v41  ;;  %v869_v39 = vpack.c.bf16 %v441_v15, %v441_v15  ;;  %v439_v22 = vsub.f32 %v431_v43, %v1094_v47  ;;  %v435_v46 = vmul.f32 %v370_v25, %v1066_v33  ;;  %v434_v27 = vmul.f32 %v369_v29, %v1075_v37 }
  0x38   : > { %397 = vrot.lane.b32.xlu1 %v857_v0, %s988_s22  ;;  %v868_v48 = vpack.c.bf16 %v440_v10, %v440_v10  ;;  %v438_v30 = vsub.f32 %v430_v44, %v1099_v50  ;;  %894 = vmatprep.subr.bf16.mxu0 %v943_v45 }
  0x39   : > { %395 = vrot.lane.b32.xlu0 %v856_v1, %s988_s22  ;;  %910 = vmatpush3.bf16.msra.mxu1 %v941_v41  ;;  %v867_v49 = vpack.c.bf16 %v439_v22, %v439_v22  ;;  %v443_v51 = vsub.f32 %v435_v46, %v1104_v53  ;;  %v442_v47 = vsub.f32 %v434_v27, %v1112_v57 }
  0x3a   : > { %907 = vmatprep.subr.bf16.mxu1 %v943_v45  ;;  %v866_v52 = vpack.c.bf16 %v438_v30, %v438_v30 }
  0x3b   : > { %895 = vmatpush3.bf16.msra.mxu0 %v943_v45  ;;  %v871_v33 = vpack.c.bf16 %v443_v51, %v443_v51  ;;  %v870_v54 = vpack.c.bf16 %v442_v47, %v442_v47 }
  0x3c   : > { %405 = vrot.lane.b32.xlu1 %v861_v14, %s988_s22 }
  0x3d   : > { %403 = vrot.lane.b32.xlu0 %v860_v19, %s988_s22  ;;  %911 = vmatpush3.bf16.msra.mxu1 %v943_v45 }
  0x40   : > { %401 = vrot.lane.b32.xlu1 %v859_v24, %s988_s22 }
  0x41   : > { %399 = vrot.lane.b32.xlu0 %v858_v28, %s988_s22 }
  0x44   : > { %409 = vrot.lane.b32.xlu1 %v863_v35, %s988_s22 }
  0x45   : > { %407 = vrot.lane.b32.xlu0 %v862_v38, %s988_s22 }
  0x48   : > { %470 = vrot.lane.b32.xlu1 %v865_v42, %s989_s4 }
  0x49   : > { %468 = vrot.lane.b32.xlu0 %v864_v34, %s989_s4 }
  0x4c   : > { %478 = vrot.lane.b32.xlu1 %v869_v39, %s989_s4 }
  0x4d   : > { %476 = vrot.lane.b32.xlu0 %v868_v48, %s989_s4 }
  0x50   : > { %474 = vrot.lane.b32.xlu1 %v867_v49, %s989_s4 }
  0x51   : > { %472 = vrot.lane.b32.xlu0 %v866_v52, %s989_s4 }
  0x54   : > { %482 = vrot.lane.b32.xlu1 %v871_v33, %s989_s4 }
  0x55   : > { %480 = vrot.lane.b32.xlu0 %v870_v54, %s989_s4 }
  0x9a   : > { %v331_v37 = vpop.permute.xlu1 %330 }
  0x9b   : > { %351 = vst.msk [vmem:[#allocation2 + $0x10] sm:$0xf] %vm346_vm1, %v331_v37  ;;  %v323_v50 = vpop.permute.xlu0 %322 }
  0x9c   : > { %347 = vst.msk [vmem:[#allocation2] sm:$0xf] %vm346_vm1, %v323_v50 }
  0x9e   : > { %v333_v55 = vpop.permute.xlu1 %332 }
  0x9f   : > { %352 = vst.msk [vmem:[#allocation2 + $0x14] sm:$0xf] %vm346_vm1, %v333_v55  ;;  %v325_v53 = vpop.permute.xlu0 %324 }
  0xa0   : > { %348 = vst.msk [vmem:[#allocation2 + $0x4] sm:$0xf] %vm346_vm1, %v325_v53 }
  0xa2   : > { %v329_v56 = vpop.permute.xlu1 %328 }
  0xa3   : > { %350 = vst.msk [vmem:[#allocation2 + $0xc] sm:$0xf] %vm346_vm1, %v329_v56  ;;  %v327_v57 = vpop.permute.xlu0 %326 }
  0xa4   : > { %349 = vst.msk [vmem:[#allocation2 + $0x8] sm:$0xf] %vm346_vm1, %v327_v57 }
  0xa6   : > { %v337_v58 = vpop.permute.xlu1 %336 }
  0xa7   : > { %354 = vst.msk [vmem:[#allocation2 + $0x1c] sm:$0xf] %vm346_vm1, %v337_v58  ;;  %v335_v59 = vpop.permute.xlu0 %334 }
  0xa8   : > { %353 = vst.msk [vmem:[#allocation2 + $0x18] sm:$0xf] %vm346_vm1, %v335_v59 }
  0xaa   : > { %v398_v60 = vpop.permute.xlu1 %397 }
  0xab   : > { %421 = vst.msk [vmem:[#allocation2 + $0x4] sm:$0xf] %vm419_vm2, %v398_v60  ;;  %v396_v61 = vpop.permute.xlu0 %395 }
  0xac   : > { %420 = vst.msk [vmem:[#allocation2] sm:$0xf] %vm419_vm2, %v396_v61 }
  0xae   : > { %v406_v62 = vpop.permute.xlu1 %405 }
  0xaf   : > { %425 = vst.msk [vmem:[#allocation2 + $0x14] sm:$0xf] %vm419_vm2, %v406_v62  ;;  %v404_v63 = vpop.permute.xlu0 %403 }
  0xb0   : > { %424 = vst.msk [vmem:[#allocation2 + $0x10] sm:$0xf] %vm419_vm2, %v404_v63 }
  0xb2   : > { %v402_v0 = vpop.permute.xlu1 %401 }
  0xb3   : > { %423 = vst.msk [vmem:[#allocation2 + $0xc] sm:$0xf] %vm419_vm2, %v402_v0  ;;  %v400_v1 = vpop.permute.xlu0 %399 }
  0xb4   : > { %422 = vst.msk [vmem:[#allocation2 + $0x8] sm:$0xf] %vm419_vm2, %v400_v1 }
  0xb6   : > { %v410_v2 = vpop.permute.xlu1 %409 }
  0xb7   : > { %427 = vst.msk [vmem:[#allocation2 + $0x1c] sm:$0xf] %vm419_vm2, %v410_v2  ;;  %v408_v3 = vpop.permute.xlu0 %407 }
  0xb8   : > { %426 = vst.msk [vmem:[#allocation2 + $0x18] sm:$0xf] %vm419_vm2, %v408_v3 }
  0xba   : > { %v471_v4 = vpop.permute.xlu1 %470 }
  0xbb   : > { %494 = vst.msk [vmem:[#allocation2 + $0x4] sm:$0xf] %vm492_vm3, %v471_v4  ;;  %v469_v5 = vpop.permute.xlu0 %468 }
  0xbc   : > { %493 = vst.msk [vmem:[#allocation2] sm:$0xf] %vm492_vm3, %v469_v5 }
  0xbe   : > { %v479_v6 = vpop.permute.xlu1 %478 }
  0xbf   : > { %498 = vst.msk [vmem:[#allocation2 + $0x14] sm:$0xf] %vm492_vm3, %v479_v6  ;;  %v477_v7 = vpop.permute.xlu0 %476 }
  0xc0   : > { %497 = vst.msk [vmem:[#allocation2 + $0x10] sm:$0xf] %vm492_vm3, %v477_v7 }
  0xc2   : > { %v475_v8 = vpop.permute.xlu1 %474 }
  0xc3   : > { %496 = vst.msk [vmem:[#allocation2 + $0xc] sm:$0xf] %vm492_vm3, %v475_v8  ;;  %v473_v9 = vpop.permute.xlu0 %472  ;;  %v942_v11 = vld [vmem:[#allocation2] sm:$0xff]  }
  0xc4   : > { %495 = vst.msk [vmem:[#allocation2 + $0x8] sm:$0xf] %vm492_vm3, %v473_v9  ;;  %896 = vmatprep.mubr.msk.bf16.mxu0 %vm568_vm4, %v942_v11 }
  0xc6   : > { %v483_v13 = vpop.permute.xlu1 %482 }
  0xc7   : > { %500 = vst.msk [vmem:[#allocation2 + $0x1c] sm:$0xf] %vm492_vm3, %v483_v13  ;;  %v481_v14 = vpop.permute.xlu0 %480  ;;  %v944_v16 = vld [vmem:[#allocation2 + $0x10] sm:$0xff]  }
  0xc8   : > { %499 = vst.msk [vmem:[#allocation2 + $0x18] sm:$0xf] %vm492_vm3, %v481_v14  ;;  %900 = vmatprep.mubr.msk.bf16.mxu1 %vm568_vm4, %v944_v16 }
  0xcb   : > { %v945_v17 = vld [vmem:[#allocation2 + $0x8] sm:$0xff]  }
  0xcc   : > { %897 = vmatmul.mubr.msk.bf16.vlgmr.msra.gmra.mxu0 %vm568_vm4, %v945_v17 }
  0xcf   : > { %v946_v19 = vld [vmem:[#allocation2 + $0x18] sm:$0xff]  }
  0xd0   : > { %901 = vmatmul.mubr.msk.bf16.vlgmr.msra.gmra.mxu1 %vm568_vm4, %v946_v19 }
 0x18c   : > { %v898_v21 = vpop.f32.mrf.mxu0 }
 0x18d   : > { %v624_v23 = vadd.f32 %v898_v21, %v817_v20 }
 0x18e   : > { %v615_v24 = vpop.f32.mrf.mxu0 }
 0x18f   : > { %v874_v25 = vpack.c.bf16 %v624_v23, %v624_v23  ;;  %v616_v26 = vadd.f32 %v817_v20, %v615_v24 }
 0x190   : > { %v899_v28 = vpop.f32.mrf.mxu0  ;;  %v902_v29 = vpop.f32.mrf.mxu1 }
 0x191   : > { %681 = vst.msk [vmem:[%s1213_s10 + $0x8] sm:$0xf] %vm678_vm5, %v874_v25  ;;  %v872_v31 = vpack.c.bf16 %v616_v26, %v616_v26  ;;  %v627_v32 = vadd.f32 %v899_v28, %v817_v20  ;;  %v640_v35 = vadd.f32 %v902_v29, %v817_v20 }
 0x192   : > { %v618_v36 = vpop.f32.mrf.mxu0  ;;  %v631_v18 = vpop.f32.mrf.mxu1 }
 0x193   : > { %679 = vst.msk [vmem:[%s1213_s10] sm:$0xf] %vm678_vm5, %v872_v31  ;;  %v875_v38 = vpack.c.bf16 %v627_v32, %v627_v32  ;;  %v878_v12 = vpack.c.bf16 %v640_v35, %v640_v35  ;;  %v619_v40 = vadd.f32 %v817_v20, %v618_v36  ;;  %v632_v41 = vadd.f32 %v817_v20, %v631_v18 }
 0x194   : > { %v903_v42 = vpop.f32.mrf.mxu1 }
 0x195   : > { %682 = vst.msk [vmem:[%s1213_s10 + $0xc] sm:$0xf] %vm678_vm5, %v875_v38  ;;  %685 = vst.msk [vmem:[%s1213_s10 + $0x18] sm:$0xf] %vm678_vm5, %v878_v12  ;;  %v873_v15 = vpack.c.bf16 %v619_v40, %v619_v40  ;;  %v876_v43 = vpack.c.bf16 %v632_v41, %v632_v41  ;;  %v643_v34 = vadd.f32 %v903_v42, %v817_v20 }
 0x196   : > { %v634_v10 = vpop.f32.mrf.mxu1 }
 0x197   : > { %680 = vst.msk [vmem:[%s1213_s10 + $0x4] sm:$0xf] %vm678_vm5, %v873_v15  ;;  %683 = vst.msk [vmem:[%s1213_s10 + $0x10] sm:$0xf] %vm678_vm5, %v876_v43  ;;  %v879_v44 = vpack.c.bf16 %v643_v34, %v643_v34  ;;  %v635_v45 = vadd.f32 %v817_v20, %v634_v10 }
 0x199   : > { %686 = vst.msk [vmem:[%s1213_s10 + $0x1c] sm:$0xf] %vm678_vm5, %v879_v44  ;;  %v877_v39 = vpack.c.bf16 %v635_v45, %v635_v45 }
 0x19b   : > { %684 = vst.msk [vmem:[%s1213_s10 + $0x14] sm:$0xf] %vm678_vm5, %v877_v39 }
 0x19c PF: > { %s13_s14 = sadd.s32 1, %s985_s14   ;;  %s1244_s12 = smov %s981_s13 }
 0x19d   : > { %p10_p5 = scmp.ge.s32.totalorder %s13_s14, 4   ;;  %s1245_s13 = smov %s1247_s15 }
 0x19f   :  { %12 = sbr.rel (!%p10_p5) target bundleno = 2 (0x2), region = 65 }

</bundles_post_ra>
